<compile_context>
chip_gen: v6e
topology: v6e:2x2x1
jax: 0.10.0
libtpu: 0.0.40
codegen_flags: <defaults>
</compile_context>

<pallas_src>
import functools

import jax
import jax.numpy as jnp
from jax.experimental import pallas as pl
from jax.experimental.pallas import tpu as pltpu

_SUB = 8          # sublane granularity: batch tile must be a multiple of 8
_MAX_TILE = 1024  # large tiles amortize per-grid-step overhead (review: 512-1024)


def _round_up(n, m):
    return -(-n // m) * m


def _autoencoder_kernel(x_ref,
                        w1_ref, b1_ref,
                        w2_ref, b2_ref,
                        w3_ref, b3_ref,
                        w4_ref, b4_ref,
                        emb_ref, rec_ref):
    """Fused encoder+decoder for one batch tile.

    x arrives un-padded / un-cast; the bf16 cast is done here in VMEM so no extra
    HBM pass is spent on input preprocessing. Accumulation is f32 on the MXU.
    """
    x = x_ref[...].astype(jnp.bfloat16)                            # (tb, I)

    # ---- encoder ----
    h1 = jnp.dot(x, w1_ref[...], preferred_element_type=jnp.float32) + b1_ref[...]
    h1 = jnp.maximum(h1, 0.0).astype(jnp.bfloat16)                 # ReLU (Dropout = id)
    emb = jnp.dot(h1, w2_ref[...], preferred_element_type=jnp.float32) + b2_ref[...]
    emb = jnp.maximum(emb, 0.0)                                    # ReLU, f32

    # ---- decoder ----
    h2 = jnp.dot(emb.astype(jnp.bfloat16), w3_ref[...],
                 preferred_element_type=jnp.float32) + b3_ref[...]
    h2 = jnp.maximum(h2, 0.0).astype(jnp.bfloat16)                 # ReLU (Dropout = id)
    rec = jnp.dot(h2, w4_ref[...], preferred_element_type=jnp.float32) + b4_ref[...]

    # Exact-width stores (block last dim == full array dim -> contiguous output DMA).
    emb_ref[...] = emb.astype(emb_ref.dtype)
    rec_ref[...] = rec.astype(rec_ref.dtype)


def init_params(key, input_size, hidden_size, embedding_dim):
    """PyTorch-style nn.Linear init: U(-1/sqrt(fan_in), 1/sqrt(fan_in)).

    Weights stored as (in_features, out_features); biases as (1, out_features)."""
    def linear(key, fan_in, fan_out):
        kw, kb = jax.random.split(key)
        bound = 1.0 / jnp.sqrt(fan_in)
        w = jax.random.uniform(kw, (fan_in, fan_out), jnp.float32, -bound, bound)
        b = jax.random.uniform(kb, (1, fan_out), jnp.float32, -bound, bound)
        return w, b

    k1, k2, k3, k4 = jax.random.split(key, 4)
    w1, b1 = linear(k1, input_size, hidden_size)      # encoder Linear 1
    w2, b2 = linear(k2, hidden_size, embedding_dim)   # encoder Linear 2
    w3, b3 = linear(k3, embedding_dim, hidden_size)   # decoder Linear 1
    w4, b4 = linear(k4, hidden_size, input_size)      # decoder Linear 2
    return dict(w1=w1, b1=b1, w2=w2, b2=b2, w3=w3, b3=b3, w4=w4, b4=b4)


def prepare_params(params):
    """One-time preprocessing: cast weights to bf16 (MXU dtype, half the HBM bytes).
    No lane padding — weights are tiny, VMEM-resident, and the kernel is not
    MXU-bound, so padding would only add bytes. Biases stay f32."""
    out = dict(params)
    for k in ("w1", "w2", "w3", "w4"):
        out[k] = params[k].astype(jnp.bfloat16)
    for k in ("b1", "b2", "b3", "b4"):
        out[k] = params[k].astype(jnp.float32)
    return out


def _pick_batch_tile(B):
    """Largest tile <= _MAX_TILE (multiple of 8), clamped to ~ceil(B/2) so the grid
    keeps >= 2 steps whenever the batch allows it (v7x megacore sharding)."""
    if B <= _SUB:
        return B                        # block == full batch dim (legal at any size)
    half = _round_up(-(-B // 2), _SUB)  # ceil(B/2) rounded up to a multiple of 8
    return max(_SUB, min(_MAX_TILE, half))


@functools.partial(jax.jit, static_argnames=("batch_tile", "out_dtype"))
def stock_autoencoder_forward(x, params, *, batch_tile=None, out_dtype=jnp.float32):
    """Runs the fused StockAutoencoder forward pass.

    Args:
      x: (B, input_size) float32.
      params: bf16 weights / f32 biases from prepare_params (PyTorch layout).
      out_dtype: jnp.float32 (module-faithful, default) or jnp.bfloat16 to further
        cut output HBM bytes if downstream tolerates it.
    Returns:
      (embedding (B, embedding_dim), reconstructed (B, input_size)) in out_dtype.
    """
    B, input_size = x.shape
    hidden_size = params["w1"].shape[1]
    embedding_dim = params["w2"].shape[1]

    if batch_tile is None:
        tb = _pick_batch_tile(B)
    else:
        if batch_tile % _SUB != 0:
            raise ValueError("batch_tile must be a multiple of 8")
        tb = batch_tile

    # Non-divisible batches are handled by Pallas (cdiv grid, masked boundary
    # writes); rows are independent so valid rows are unaffected.
    grid = (pl.cdiv(B, tb),)

    # Weights/biases: constant index_maps -> loaded once, VMEM-resident across grid.
    full = lambda r, c: pl.BlockSpec((r, c), lambda i: (0, 0))

    emb, rec = pl.pallas_call(
        _autoencoder_kernel,
        out_shape=(
            jax.ShapeDtypeStruct((B, embedding_dim), out_dtype),
            jax.ShapeDtypeStruct((B, input_size), out_dtype),
        ),
        grid_spec=pltpu.PrefetchScalarGridSpec(
            num_scalar_prefetch=0,
            grid=grid,
            in_specs=[
                pl.BlockSpec((tb, input_size), lambda i: (i, 0)),   # x batch tile
                full(input_size, hidden_size), full(1, hidden_size),      # w1, b1
                full(hidden_size, embedding_dim), full(1, embedding_dim), # w2, b2
                full(embedding_dim, hidden_size), full(1, hidden_size),   # w3, b3
                full(hidden_size, input_size), full(1, input_size),       # w4, b4
            ],
            out_specs=[
                pl.BlockSpec((tb, embedding_dim), lambda i: (i, 0)),  # embedding
                pl.BlockSpec((tb, input_size), lambda i: (i, 0)),     # reconstructed
            ],
        ),
        compiler_params=pltpu.CompilerParams(
            dimension_semantics=("parallel",)),
    )(x,
      params["w1"], params["b1"],
      params["w2"], params["b2"],
      params["w3"], params["b3"],
      params["w4"], params["b4"])

    return emb, rec


def reference_forward(x, params):
    """Pure-JAX reference mirroring the kernel's numerics (bf16 inputs, f32 accum)."""
    bf = lambda a: a.astype(jnp.bfloat16).astype(jnp.float32)
    f32 = lambda a: a.astype(jnp.float32)
    h1 = jnp.maximum(bf(x) @ f32(params["w1"]) + params["b1"], 0.0)
    emb = jnp.maximum(bf(h1) @ f32(params["w2"]) + params["b2"], 0.0)
    h2 = jnp.maximum(bf(emb) @ f32(params["w3"]) + params["b3"], 0.0)
    rec = bf(h2) @ f32(params["w4"]) + params["b4"]
    return emb, rec


if __name__ == "__main__":
    # Small shapes consistent with the module's forward:
    # batch=8 stocks, input_size=32 features, hidden=64, embedding_dim=16.
    batch, input_size, hidden_size, embedding_dim = 8, 32, 64, 16

    key = jax.random.PRNGKey(0)
    kx, kp = jax.random.split(key)
    x = jax.random.normal(kx, (batch, input_size), jnp.float32)

    raw_params = init_params(kp, input_size, hidden_size, embedding_dim)
    params = prepare_params(raw_params)

    emb, rec = stock_autoencoder_forward(x, params)
    emb, rec = jax.block_until_ready((emb, rec))

    emb_ref, rec_ref = reference_forward(x, params)

    assert emb.shape == (batch, embedding_dim)
    assert rec.shape == (batch, input_size)
    assert jnp.allclose(emb, emb_ref, atol=2e-3, rtol=2e-3), \
        float(jnp.max(jnp.abs(emb - emb_ref)))
    assert jnp.allclose(rec, rec_ref, atol=2e-3, rtol=2e-3), \
        float(jnp.max(jnp.abs(rec - rec_ref)))

    print("KERNEL_OK")
</pallas_src>

<mosaic_0001>
module attributes {stable_mosaic.version = 11 : i64} {
  func.func @_autoencoder_kernel(%arg0: i32, %arg1: memref<8x32xf32, #tpu.memory_space<vmem>>, %arg2: memref<32x64xbf16, #tpu.memory_space<vmem>>, %arg3: memref<1x64xf32, #tpu.memory_space<vmem>>, %arg4: memref<64x16xbf16, #tpu.memory_space<vmem>>, %arg5: memref<1x16xf32, #tpu.memory_space<vmem>>, %arg6: memref<16x64xbf16, #tpu.memory_space<vmem>>, %arg7: memref<1x64xf32, #tpu.memory_space<vmem>>, %arg8: memref<64x32xbf16, #tpu.memory_space<vmem>>, %arg9: memref<1x32xf32, #tpu.memory_space<vmem>>, %arg10: memref<8x16xf32, #tpu.memory_space<vmem>>, %arg11: memref<8x32xf32, #tpu.memory_space<vmem>>) attributes {dimension_semantics = [#tpu.dimension_semantics<parallel>], iteration_bounds = array<i64: 1>, scalar_prefetch = 0 : i64, scratch_operands = 0 : i64, tpu.core_type = #tpu.core_type<tc>, window_params = [{transform_indices = @transform_0, window_bounds = array<i64: 8, 32>}, {pipeline_mode = #tpu.pipeline_mode<synchronous>, transform_indices = @transform_1, window_bounds = array<i64: 32, 64>}, {pipeline_mode = #tpu.pipeline_mode<synchronous>, transform_indices = @transform_2, window_bounds = array<i64: 1, 64>}, {pipeline_mode = #tpu.pipeline_mode<synchronous>, transform_indices = @transform_3, window_bounds = array<i64: 64, 16>}, {pipeline_mode = #tpu.pipeline_mode<synchronous>, transform_indices = @transform_4, window_bounds = array<i64: 1, 16>}, {pipeline_mode = #tpu.pipeline_mode<synchronous>, transform_indices = @transform_5, window_bounds = array<i64: 16, 64>}, {pipeline_mode = #tpu.pipeline_mode<synchronous>, transform_indices = @transform_6, window_bounds = array<i64: 1, 64>}, {pipeline_mode = #tpu.pipeline_mode<synchronous>, transform_indices = @transform_7, window_bounds = array<i64: 64, 32>}, {pipeline_mode = #tpu.pipeline_mode<synchronous>, transform_indices = @transform_8, window_bounds = array<i64: 1, 32>}, {transform_indices = @transform_9, window_bounds = array<i64: 8, 16>}, {transform_indices = @transform_10, window_bounds = array<i64: 8, 32>}]} {
    %c0 = arith.constant 0 : index
    %c0_0 = arith.constant 0 : index
    %0 = vector.load %arg1[%c0, %c0_0] : memref<8x32xf32, #tpu.memory_space<vmem>>, vector<8x32xf32>
    %1 = arith.truncf %0 : vector<8x32xf32> to vector<8x32xbf16>
    %c0_1 = arith.constant 0 : index
    %c0_2 = arith.constant 0 : index
    %2 = vector.load %arg2[%c0_1, %c0_2] : memref<32x64xbf16, #tpu.memory_space<vmem>>, vector<32x64xbf16>
    %cst = arith.constant dense<0.000000e+00> : vector<8x64xf32>
    %3 = tpu.matmul %1, %2, %cst {dimension_numbers = #tpu.dot_dimension_numbers<[1], [0], [0], [1], [0, 0, 1, 1], [], []>} : vector<8x32xbf16>, vector<32x64xbf16>, vector<8x64xf32> -> vector<8x64xf32>
    %c0_3 = arith.constant 0 : index
    %c0_4 = arith.constant 0 : index
    %4 = vector.load %arg3[%c0_3, %c0_4] : memref<1x64xf32, #tpu.memory_space<vmem>>, vector<1x64xf32>
    %5 = vector.broadcast %4 : vector<1x64xf32> to vector<8x64xf32>
    %6 = arith.addf %3, %5 : vector<8x64xf32>
    %cst_5 = arith.constant 0.000000e+00 : f32
    %7 = vector.broadcast %cst_5 : f32 to vector<8x64xf32>
    %8 = arith.maximumf %6, %7 : vector<8x64xf32>
    %9 = arith.truncf %8 : vector<8x64xf32> to vector<8x64xbf16>
    %c0_6 = arith.constant 0 : index
    %c0_7 = arith.constant 0 : index
    %10 = vector.load %arg4[%c0_6, %c0_7] : memref<64x16xbf16, #tpu.memory_space<vmem>>, vector<64x16xbf16>
    %cst_8 = arith.constant dense<0.000000e+00> : vector<8x16xf32>
    %11 = tpu.matmul %9, %10, %cst_8 {dimension_numbers = #tpu.dot_dimension_numbers<[1], [0], [0], [1], [0, 0, 1, 1], [], []>} : vector<8x64xbf16>, vector<64x16xbf16>, vector<8x16xf32> -> vector<8x16xf32>
    %c0_9 = arith.constant 0 : index
    %c0_10 = arith.constant 0 : index
    %12 = vector.load %arg5[%c0_9, %c0_10] : memref<1x16xf32, #tpu.memory_space<vmem>>, vector<1x16xf32>
    %13 = vector.broadcast %12 : vector<1x16xf32> to vector<8x16xf32>
    %14 = arith.addf %11, %13 : vector<8x16xf32>
    %cst_11 = arith.constant 0.000000e+00 : f32
    %15 = vector.broadcast %cst_11 : f32 to vector<8x16xf32>
    %16 = arith.maximumf %14, %15 : vector<8x16xf32>
    %17 = arith.truncf %16 : vector<8x16xf32> to vector<8x16xbf16>
    %c0_12 = arith.constant 0 : index
    %c0_13 = arith.constant 0 : index
    %18 = vector.load %arg6[%c0_12, %c0_13] : memref<16x64xbf16, #tpu.memory_space<vmem>>, vector<16x64xbf16>
    %cst_14 = arith.constant dense<0.000000e+00> : vector<8x64xf32>
    %19 = tpu.matmul %17, %18, %cst_14 {dimension_numbers = #tpu.dot_dimension_numbers<[1], [0], [0], [1], [0, 0, 1, 1], [], []>} : vector<8x16xbf16>, vector<16x64xbf16>, vector<8x64xf32> -> vector<8x64xf32>
    %c0_15 = arith.constant 0 : index
    %c0_16 = arith.constant 0 : index
    %20 = vector.load %arg7[%c0_15, %c0_16] : memref<1x64xf32, #tpu.memory_space<vmem>>, vector<1x64xf32>
    %21 = vector.broadcast %20 : vector<1x64xf32> to vector<8x64xf32>
    %22 = arith.addf %19, %21 : vector<8x64xf32>
    %cst_17 = arith.constant 0.000000e+00 : f32
    %23 = vector.broadcast %cst_17 : f32 to vector<8x64xf32>
    %24 = arith.maximumf %22, %23 : vector<8x64xf32>
    %25 = arith.truncf %24 : vector<8x64xf32> to vector<8x64xbf16>
    %c0_18 = arith.constant 0 : index
    %c0_19 = arith.constant 0 : index
    %26 = vector.load %arg8[%c0_18, %c0_19] : memref<64x32xbf16, #tpu.memory_space<vmem>>, vector<64x32xbf16>
    %cst_20 = arith.constant dense<0.000000e+00> : vector<8x32xf32>
    %27 = tpu.matmul %25, %26, %cst_20 {dimension_numbers = #tpu.dot_dimension_numbers<[1], [0], [0], [1], [0, 0, 1, 1], [], []>} : vector<8x64xbf16>, vector<64x32xbf16>, vector<8x32xf32> -> vector<8x32xf32>
    %c0_21 = arith.constant 0 : index
    %c0_22 = arith.constant 0 : index
    %28 = vector.load %arg9[%c0_21, %c0_22] : memref<1x32xf32, #tpu.memory_space<vmem>>, vector<1x32xf32>
    %29 = vector.broadcast %28 : vector<1x32xf32> to vector<8x32xf32>
    %30 = arith.addf %27, %29 : vector<8x32xf32>
    %c0_23 = arith.constant 0 : index
    %c0_24 = arith.constant 0 : index
    %31 = vector.load %arg10[%c0_23, %c0_24] : memref<8x16xf32, #tpu.memory_space<vmem>>, vector<8x16xf32>
    tpu.vector_store %arg10[%c0_23, %c0_24], %16 {strides = array<i32>} : memref<8x16xf32, #tpu.memory_space<vmem>>, vector<8x16xf32>,
    %c0_25 = arith.constant 0 : index
    %c0_26 = arith.constant 0 : index
    %32 = vector.load %arg11[%c0_25, %c0_26] : memref<8x32xf32, #tpu.memory_space<vmem>>, vector<8x32xf32>
    tpu.vector_store %arg11[%c0_25, %c0_26], %30 {strides = array<i32>} : memref<8x32xf32, #tpu.memory_space<vmem>>, vector<8x32xf32>,
    return
  }
  func.func @transform_0(%arg0: i32) -> (i32, i32) {
    %c0_i32 = arith.constant 0 : i32
    %c0_i32_0 = arith.constant 0 : i32
    return %arg0, %c0_i32 : i32, i32
  }
  func.func @transform_1(%arg0: i32) -> (i32, i32) {
    %c0_i32 = arith.constant 0 : i32
    %c0_i32_0 = arith.constant 0 : i32
    %c0_i32_1 = arith.constant 0 : i32
    return %c0_i32, %c0_i32_0 : i32, i32
  }
  func.func @transform_2(%arg0: i32) -> (i32, i32) {
    %c0_i32 = arith.constant 0 : i32
    %c0_i32_0 = arith.constant 0 : i32
    %c0_i32_1 = arith.constant 0 : i32
    return %c0_i32, %c0_i32_0 : i32, i32
  }
  func.func @transform_3(%arg0: i32) -> (i32, i32) {
    %c0_i32 = arith.constant 0 : i32
    %c0_i32_0 = arith.constant 0 : i32
    %c0_i32_1 = arith.constant 0 : i32
    return %c0_i32, %c0_i32_0 : i32, i32
  }
  func.func @transform_4(%arg0: i32) -> (i32, i32) {
    %c0_i32 = arith.constant 0 : i32
    %c0_i32_0 = arith.constant 0 : i32
    %c0_i32_1 = arith.constant 0 : i32
    return %c0_i32, %c0_i32_0 : i32, i32
  }
  func.func @transform_5(%arg0: i32) -> (i32, i32) {
    %c0_i32 = arith.constant 0 : i32
    %c0_i32_0 = arith.constant 0 : i32
    %c0_i32_1 = arith.constant 0 : i32
    return %c0_i32, %c0_i32_0 : i32, i32
  }
  func.func @transform_6(%arg0: i32) -> (i32, i32) {
    %c0_i32 = arith.constant 0 : i32
    %c0_i32_0 = arith.constant 0 : i32
    %c0_i32_1 = arith.constant 0 : i32
    return %c0_i32, %c0_i32_0 : i32, i32
  }
  func.func @transform_7(%arg0: i32) -> (i32, i32) {
    %c0_i32 = arith.constant 0 : i32
    %c0_i32_0 = arith.constant 0 : i32
    %c0_i32_1 = arith.constant 0 : i32
    return %c0_i32, %c0_i32_0 : i32, i32
  }
  func.func @transform_8(%arg0: i32) -> (i32, i32) {
    %c0_i32 = arith.constant 0 : i32
    %c0_i32_0 = arith.constant 0 : i32
    %c0_i32_1 = arith.constant 0 : i32
    return %c0_i32, %c0_i32_0 : i32, i32
  }
  func.func @transform_9(%arg0: i32) -> (i32, i32) {
    %c0_i32 = arith.constant 0 : i32
    %c0_i32_0 = arith.constant 0 : i32
    return %arg0, %c0_i32 : i32, i32
  }
  func.func @transform_10(%arg0: i32) -> (i32, i32) {
    %c0_i32 = arith.constant 0 : i32
    %c0_i32_0 = arith.constant 0 : i32
    return %arg0, %c0_i32 : i32, i32
  }
}

</mosaic_0001>

<bundles_post_ra>
// kernel: stock_autoencoder_forward.1
= control target key start
LH: loop header
LB: loop body
LE: loop exit
PB: predicated region body
PF: predicated region fallthrough
CT: control target
= control target key end

     0   :  { %16 = vsyncpa [#allocation3], 0  ;;  %v497_v1 = vmov 0.0   ;;  %vm498_vm0 = vmmov 0   ;;  %vm62_vm1 = vcmask 261120   ;;  %s618_s0 = inlined_call_operand.vmem [shape: f32[8,32], index: 0, kind: input, shape index: {}]   ;;  %s619_s1 = inlined_call_operand.vmem [shape: bf16[32,64], index: 1, kind: input, shape index: {}]   ;;  %s620_s2 = inlined_call_operand.vmem [shape: f32[1,64], index: 2, kind: input, shape index: {}]   ;;  %s621_s3 = inlined_call_operand.vmem [shape: bf16[64,16], index: 3, kind: input, shape index: {}]   ;;  %s622_s4 = inlined_call_operand.vmem [shape: f32[1,16], index: 4, kind: input, shape index: {}]   ;;  %s623_s5 = inlined_call_operand.vmem [shape: bf16[16,64], index: 5, kind: input, shape index: {}]   ;;  %s624_s6 = inlined_call_operand.vmem [shape: f32[1,64], index: 6, kind: input, shape index: {}]   ;;  %s625_s7 = inlined_call_operand.vmem [shape: bf16[64,32], index: 7, kind: input, shape index: {}]   ;;  %s626_s8 = inlined_call_operand.vmem [shape: f32[1,32], index: 8, kind: input, shape index: {}]   ;;  %s627_s9 = inlined_call_operand.hbm [shape: f32[8,16], index: 9, kind: output, shape index: {0}]   ;;  %s628_s10 = inlined_call_operand.hbm [shape: f32[8,32], index: 10, kind: output, shape index: {1}]  }
   0x1   :  { %v442_v0 = vld [vmem:[%s619_s1 + $0x8] sm:$0xff]   ;;  %400 = vmatprep.subr.bf16.mxu1 %v497_v1  ;;  %v443_v2 = vld [vmem:[%s619_s1] sm:$0xff]   ;;  %420 = vmatprep.subr.bf16.mxu0 %v497_v1  ;;  %v444_v4 = vld [vmem:[%s621_s3 + $0x18] sm:$0xff]  }
   0x2   :  { %401 = vmatpush3.bf16.msra.mxu1 %v442_v0  ;;  %404 = vmatprep.mubr.msk.bf16.mxu1 %vm498_vm0, %v497_v1  ;;  %v37_v3 = vld [vmem:[%s618_s0] sm:$0xff] }
   0x3   :  { %402 = vmatprep.subr.bf16.mxu1 %v497_v1  ;;  %422 = vmatprep.mubr.msk.bf16.mxu0 %vm498_vm0, %v497_v1  ;;  %v38_v5 = vpack.c.bf16 %v37_v3, %v37_v3 }
   0x6   :  { %403 = vmatpush3.bf16.msra.mxu1 %v443_v2 }
   0x7   :  { %408 = vmatprep.subr.bf16.mxu1 %v497_v1 }
   0x9   :  { %405 = vmatmul.mubr.msk.bf16.vlgmr.msra.gmra.mxu1 %vm62_vm1, %v38_v5 }
   0xa   :  { %17 = vsyncpa [#allocation5], 0  ;;  %409 = vmatpush3.bf16.msra.mxu1 %v444_v4  ;;  %v445_v6 = vld [vmem:[%s621_s3 + $0x10] sm:$0xff]   ;;  %416 = vmatprep.mubr.msk.bf16.mxu1 %vm498_vm0, %v497_v1  ;;  %v446_v7 = vld [vmem:[%s621_s3 + $0x8] sm:$0xff]   ;;  %vm147_vm2 = vcmask 523264   ;;  %vm208_vm3 = vcmask 130048  }
   0xb   :  { %410 = vmatprep.subr.bf16.mxu1 %v497_v1  ;;  %v447_v8 = vld [vmem:[%s621_s3] sm:$0xff]   ;;  %v449_v24 = vld [vmem:[%s625_s7 + $0x18] sm:$0xff]   ;;  %v450_v27 = vld [vmem:[%s625_s7 + $0x10] sm:$0xff]   ;;  %s499_s17 = smov [#allocation2]  }
   0xc   :  { %v366_v9 = vld [vmem:[%s620_s2] ss:$0 sm:$0xff]  ;;  %v451_v28 = vld [vmem:[%s625_s7 + $0x8] sm:$0xff]   ;;  %s344_s18 = sshll.u32 %s499_s17, 4  ;;  %s345_s18 = int_to_ptr.vmem [resolvable:$true] %s344_s18 }
   0xd   :  { %v448_v17 = vld [vmem:[%s623_s5] sm:$0xff]   ;;  %s453_s19 = scalar_lea.vmem %s345_s18, 128  ;;  %p458_p1 = scmp.lt.s32.totalorder %s345_s18, %s345_s18 }
   0xe   :  { %411 = vmatpush3.bf16.msra.mxu1 %v445_v6  ;;  %421 = vmatpush3.bf16.msra.mxu0 %v448_v17  ;;  %v370_v18 = vld [vmem:[%s622_s4] ss:$0 sm:$0xff]  ;;  %p454_p0 = scmp.ne.s32.totalorder %s345_s18, %s453_s19  ;;  %p459_p2 = scmp.lt.s32.totalorder %s453_s19, %s453_s19 }
   0xf   :  { %412 = vmatprep.subr.bf16.mxu1 %v497_v1  ;;  %426 = vmatprep.subr.bf16.mxu0 %v497_v1  ;;  %v452_v29 = vld [vmem:[%s625_s7] sm:$0xff]  }
  0x10   :  { %v376_v30 = vld [vmem:[%s624_s6] ss:$0 sm:$0xff]  ;;  %p460_p3 = por %p459_p2, %p458_p1 }
  0x12   :  { %413 = vmatpush3.bf16.msra.mxu1 %v446_v7  ;;  %p461_p4 = pnand %p460_p3, %p454_p0 }
  0x13   :  { %414 = vmatprep.subr.bf16.mxu1 %v497_v1 }
  0x16   :  { %415 = vmatpush3.bf16.msra.mxu1 %v447_v8 }
  0xc9   :  { %v100_v10 = vpop.f32.mrf.mxu1 }
  0xca   :  { %v101_v11 = vadd.f32 %v366_v9, %v100_v10 }
  0xcb   :  { %v406_v12 = vpop.f32.mrf.mxu1 }
  0xcc   :  { %v106_v13 = vmax.f32 %v101_v11, 0.0 }
  0xcd   :  { %v103_v14 = vpop.f32.mrf.mxu1 }
  0xce   :  { %v107_v15 = vpack.c.bf16 %v106_v13, %v106_v13 }
  0xcf   :  { %v407_v16 = vpop.f32.mrf.mxu1 }
  0xd0   :  { %417 = vmatmul.mubr.msk.bf16.vlgmr.msra.gmra.mxu1 %vm147_vm2, %v107_v15 }
 0x190   :  { %v185_v19 = vpop.f32.mrf.mxu1 }
 0x191   :  { %v186_v20 = vadd.f32 %v370_v18, %v185_v19 }
 0x192   :  { %v418_v21 = vpop.f32.mrf.mxu1 }
 0x193   :  { %v191_v22 = vmax.f32 %v186_v20, 0.0 }
 0x194   :  { %v188_v23 = vpop.f32.mrf.mxu1 }
 0x195   :  { %v192_v25 = vpack.c.bf16 %v191_v22, %v191_v22  ;;  %336 = vst.msk [vmem:[#allocation2] sm:$0xff] %vm208_vm3, %v191_v22 }
 0x196   :  { %v419_v26 = vpop.f32.mrf.mxu1 }
 0x197   :  { %423 = vmatmul.mubr.msk.bf16.vlgmr.msra.gmra.mxu0 %vm208_vm3, %v192_v25 }
 0x198   :  { %427 = vmatpush3.bf16.msra.mxu0 %v449_v24  ;;  %434 = vmatprep.mubr.msk.bf16.mxu0 %vm498_vm0, %v497_v1 }
 0x199   :  { %428 = vmatprep.subr.bf16.mxu0 %v497_v1 }
 0x19c   :  { %429 = vmatpush3.bf16.msra.mxu0 %v450_v27 }
 0x19d   :  { %430 = vmatprep.subr.bf16.mxu0 %v497_v1 }
 0x1a0   :  { %431 = vmatpush3.bf16.msra.mxu0 %v451_v28 }
 0x1a1   :  { %432 = vmatprep.subr.bf16.mxu0 %v497_v1 }
 0x1a4   :  { %433 = vmatpush3.bf16.msra.mxu0 %v452_v29 }
 0x257   :  { %v246_v31 = vpop.f32.mrf.mxu0 }
 0x258   :  { %v247_v32 = vadd.f32 %v376_v30, %v246_v31 }
 0x259   :  { %v424_v33 = vpop.f32.mrf.mxu0 }
 0x25a   :  { %v252_v34 = vmax.f32 %v247_v32, 0.0 }
 0x25b   :  { %v249_v35 = vpop.f32.mrf.mxu0 }
 0x25c   :  { %v253_v36 = vpack.c.bf16 %v252_v34, %v252_v34 }
 0x25d   :  { %v425_v37 = vpop.f32.mrf.mxu0 }
 0x25e   :  { %435 = vmatmul.mubr.msk.bf16.vlgmr.msra.gmra.mxu0 %vm147_vm2, %v253_v36 }
 0x25f   :  { %464 = shalt.err (!%p461_p4)
}
 0x260   :  { %347 = dma.vmem_to_hbm [thread:$0]  %s345_s18, 128, %s627_s9, [#allocation3]   ;;  %v379_v38 = vld [vmem:[%s626_s8] ss:$0 sm:$0xff] }
 0x261   :  { %s500_s21 = smov [#allocation4]  }
 0x262   :  { %s354_s0 = sshll.u32 %s500_s21, 4  ;;  %s355_s0 = int_to_ptr.vmem [resolvable:$true] %s354_s0 }
 0x263   :  { %s473_s22 = scalar_lea.vmem %s355_s0, 128  ;;  %p478_p6 = scmp.lt.s32.totalorder %s355_s0, %s355_s0 }
 0x264   :  { %p474_p5 = scmp.ne.s32.totalorder %s355_s0, %s473_s22  ;;  %p479_p7 = scmp.lt.s32.totalorder %s473_s22, %s473_s22 }
 0x266   :  { %p480_p8 = por %p479_p7, %p478_p6 }
 0x268   :  { %p481_p9 = pnand %p480_p8, %p474_p5 }
 0x31e   :  { %v330_v39 = vpop.f32.mrf.mxu0 }
 0x31f   :  { %v331_v40 = vadd.f32 %v379_v38, %v330_v39 }
 0x320   :  { %v436_v41 = vpop.f32.mrf.mxu0 }
 0x321   :  { %337 = vst.msk [vmem:[#allocation4] sm:$0xff] %vm62_vm1, %v331_v40 }
 0x322   :  { %v333_v42 = vpop.f32.mrf.mxu0 }
 0x323   :  { %484 = shalt.err (!%p481_p9)
}
 0x324   :  { %357 = dma.vmem_to_hbm [thread:$0]  %s355_s0, 128, %s628_s10, [#allocation5]   ;;  %v437_v43 = vpop.f32.mrf.mxu0 }
 0x325   :  { %493 = dma.done.wait [#allocation3], 128  }
 0x326   :  { %494 = vsyncadd [#allocation3], 4294967168 }
 0x327   :  { %495 = dma.done.wait [#allocation5], 128  }
 0x328   :  { %496 = vsyncadd [#allocation5], 4294967168 }
 0x329   :  { %364 = vsyncpa [#allocation3], 1 }
 0x32a   :  { %365 = vsyncpa [#allocation5], 1 }

</bundles_post_ra>
